<compile_context>
chip_gen: v7x
topology: tpu7x:2x2x1
jax: 0.10.0
libtpu: 0.0.40
codegen_flags: <defaults>
</compile_context>

<pallas_src>
import functools
import math

import jax
import jax.numpy as jnp
from jax.experimental import pallas as pl
from jax.experimental.pallas import tpu as pltpu


def _round_up(x, m):
    return (x + m - 1) // m * m


# ----------------------------------------------------------------------------
# Fused SAGEConv layer kernel
# ----------------------------------------------------------------------------
def sage_layer_kernel(x_tile_ref, a_tile_ref, x_all_ref, w_neigh_ref,
                      w_self_ref, b_ref, o_ref, *, apply_relu):
    # mean neighbour aggregation for this tile of target nodes:
    #   [tb, N] @ [N, D_in]   (bf16 operands, f32 accumulation on the MXU)
    agg = jnp.dot(a_tile_ref[...], x_all_ref[...],
                  preferred_element_type=jnp.float32)
    # SAGEConv: lin_l(mean_j x_j) + lin_r(x_i) + b
    out = jnp.dot(agg.astype(w_neigh_ref.dtype), w_neigh_ref[...],
                  preferred_element_type=jnp.float32)
    out = out + jnp.dot(x_tile_ref[...], w_self_ref[...],
                        preferred_element_type=jnp.float32)
    out = out + b_ref[...]                      # bias in f32
    if apply_relu:
        out = jnp.maximum(out, 0.0)
    o_ref[...] = out.astype(o_ref.dtype)


def sage_conv(x, a_norm, w_neigh, w_self, b, *, apply_relu, tb, out_dtype):
    """One SAGEConv layer.  x: [N_pad, D_in] bf16, a_norm: [N_pad, N_pad] bf16,
    w_*: [D_in, D_out] bf16 (pre-transposed), b: [D_out] f32."""
    n_pad, d_in = x.shape
    d_out = w_neigh.shape[1]
    assert n_pad % tb == 0

    grid = (n_pad // tb,)
    flops = 2 * n_pad * (n_pad * d_in + 2 * d_in * d_out)
    bytes_accessed = (x.size * 2 + a_norm.size * 2 + w_neigh.size * 2
                      + w_self.size * 2 + b.size * 4
                      + n_pad * d_out * jnp.dtype(out_dtype).itemsize)

    return pl.pallas_call(
        functools.partial(sage_layer_kernel, apply_relu=apply_relu),
        out_shape=jax.ShapeDtypeStruct((n_pad, d_out), out_dtype),
        grid_spec=pltpu.PrefetchScalarGridSpec(
            num_scalar_prefetch=0,
            grid=grid,
            in_specs=[
                pl.BlockSpec((tb, d_in), lambda i: (i, 0)),     # X row tile (root features)
                pl.BlockSpec((tb, n_pad), lambda i: (i, 0)),    # adjacency row tile
                pl.BlockSpec((n_pad, d_in), lambda i: (0, 0)),  # full X (resident, for aggregation)
                pl.BlockSpec((d_in, d_out), lambda i: (0, 0)),  # W_neigh (resident)
                pl.BlockSpec((d_in, d_out), lambda i: (0, 0)),  # W_self  (resident)
                pl.BlockSpec((1, d_out), lambda i: (0, 0)),     # bias
            ],
            out_specs=pl.BlockSpec((tb, d_out), lambda i: (i, 0)),
        ),
        compiler_params=pltpu.CompilerParams(
            dimension_semantics=("parallel",),
            vmem_limit_bytes=48 * 1024 * 1024,
        ),
        cost_estimate=pl.CostEstimate(flops=int(flops), transcendentals=0,
                                      bytes_accessed=int(bytes_accessed)),
    )(x, a_norm, x, w_neigh, w_self, b.reshape(1, d_out))


# ----------------------------------------------------------------------------
# Graph plumbing (plain JAX, outside the kernel)
# ----------------------------------------------------------------------------
def build_mean_adjacency(edge_index, n_pad):
    """Dense row-normalized adjacency: A[i, j] = 1/deg_in(i) for each edge j->i.
    Mean aggregation over incoming edges == A @ X (isolated nodes aggregate to 0)."""
    src, dst = edge_index[0], edge_index[1]
    a = jnp.zeros((n_pad, n_pad), jnp.float32)
    a = a.at[dst, src].add(1.0)
    deg = a.sum(axis=1, keepdims=True)
    return a / jnp.maximum(deg, 1.0)


def graphsage_net_forward(x, edge_index, params):
    """Net.forward: conv1 -> ReLU -> dropout (identity at inference) -> conv2."""
    n, in_dim = x.shape
    hid_dim = params["w1_self"].shape[1]
    out_dim = params["w2_self"].shape[1]

    # Node-row tile: large (128/256) and a multiple of 16 (bf16 sublane packing);
    # tiny graphs collapse to a single grid step.
    if n >= 512:
        tb = 256
    elif n >= 128:
        tb = 128
    else:
        tb = _round_up(n, 16)
    n_pad = _round_up(n, tb)

    # Lane-dense feature dims (multiples of 128) -> unmasked vector stores.
    in_p = _round_up(in_dim, 128)
    hid_p = _round_up(hid_dim, 128)
    out_p = _round_up(out_dim, 128)

    def pad2(a, r, c):
        return jnp.pad(a, ((0, r - a.shape[0]), (0, c - a.shape[1])))

    def pad1(a, c):
        return jnp.pad(a, ((0, c - a.shape[0]),))

    x_p = pad2(x, n_pad, in_p).astype(jnp.bfloat16)
    a_norm = build_mean_adjacency(edge_index, n_pad).astype(jnp.bfloat16)

    w1n = pad2(params["w1_neigh"], in_p, hid_p).astype(jnp.bfloat16)
    w1s = pad2(params["w1_self"], in_p, hid_p).astype(jnp.bfloat16)
    b1 = pad1(params["b1"], hid_p).astype(jnp.float32)
    w2n = pad2(params["w2_neigh"], hid_p, out_p).astype(jnp.bfloat16)
    w2s = pad2(params["w2_self"], hid_p, out_p).astype(jnp.bfloat16)
    b2 = pad1(params["b2"], out_p).astype(jnp.float32)

    # Layer 1 (+ fused ReLU); output kept in bf16 to feed layer 2's MXU directly.
    h = sage_conv(x_p, a_norm, w1n, w1s, b1,
                  apply_relu=True, tb=tb, out_dtype=jnp.bfloat16)
    # F.dropout(x, training=False) is the identity at inference time.
    out = sage_conv(h, a_norm, w2n, w2s, b2,
                    apply_relu=False, tb=tb, out_dtype=jnp.float32)
    return out[:n, :out_dim]


# ----------------------------------------------------------------------------
# Demo / self-check
# ----------------------------------------------------------------------------
def _linear_init(kw, kb, fan_in, fan_out, bias=True):
    """PyTorch-style nn.Linear init, weight pre-transposed to [in, out]."""
    bound = 1.0 / math.sqrt(fan_in)
    w = jax.random.uniform(kw, (fan_in, fan_out), jnp.float32, -bound, bound)
    if bias:
        b = jax.random.uniform(kb, (fan_out,), jnp.float32, -bound, bound)
    else:
        b = jnp.zeros((fan_out,), jnp.float32)
    return w, b


if __name__ == "__main__":
    key = jax.random.PRNGKey(0)
    k_x, k_e, k1n, k1s, k1b, k2n, k2s, k2b = jax.random.split(key, 8)

    # Small graph consistent with Net(in_dim, hid_dim, out_dim).
    N, E = 64, 256
    in_dim, hid_dim, out_dim = 32, 64, 16

    x = jax.random.normal(k_x, (N, in_dim), jnp.float32)
    edge_index = jax.random.randint(k_e, (2, E), 0, N, dtype=jnp.int32)

    w1n, b1 = _linear_init(k1n, k1b, in_dim, hid_dim, bias=True)    # lin_l (aggregated)
    w1s, _ = _linear_init(k1s, k1b, in_dim, hid_dim, bias=False)    # lin_r (root)
    w2n, b2 = _linear_init(k2n, k2b, hid_dim, out_dim, bias=True)
    w2s, _ = _linear_init(k2s, k2b, hid_dim, out_dim, bias=False)

    params = dict(w1_neigh=w1n, w1_self=w1s, b1=b1,
                  w2_neigh=w2n, w2_self=w2s, b2=b2)

    out = graphsage_net_forward(x, edge_index, params)
    out = jax.block_until_ready(out)
    assert out.shape == (N, out_dim)

    # Plain-JAX reference with the same bf16 operand casts / f32 accumulation.
    a_ref = build_mean_adjacency(edge_index, N)

    def ref_layer(xr, wn, ws, b, relu):
        xb = xr.astype(jnp.bfloat16)
        ab = a_ref.astype(jnp.bfloat16)
        agg = jnp.dot(ab, xb, preferred_element_type=jnp.float32)
        o = jnp.dot(agg.astype(jnp.bfloat16), wn.astype(jnp.bfloat16),
                    preferred_element_type=jnp.float32)
        o = o + jnp.dot(xb, ws.astype(jnp.bfloat16),
                        preferred_element_type=jnp.float32)
        o = o + b
        return jnp.maximum(o, 0.0) if relu else o

    h_ref = ref_layer(x, w1n, w1s, b1, True).astype(jnp.bfloat16).astype(jnp.float32)
    ref = ref_layer(h_ref, w2n, w2s, b2, False)

    max_err = float(jnp.max(jnp.abs(out - ref)))
    assert jnp.allclose(out, ref, atol=5e-2, rtol=5e-2), max_err

    print("KERNEL_OK")
</pallas_src>

<mosaic_0001>
module attributes {stable_mosaic.version = 11 : i64} {
  func.func @sage_layer_kernel(%arg0: i32, %arg1: memref<64x128xbf16, #tpu.memory_space<vmem>>, %arg2: memref<64x64xbf16, #tpu.memory_space<vmem>>, %arg3: memref<64x128xbf16, #tpu.memory_space<vmem>>, %arg4: memref<128x128xbf16, #tpu.memory_space<vmem>>, %arg5: memref<128x128xbf16, #tpu.memory_space<vmem>>, %arg6: memref<1x128xf32, #tpu.memory_space<vmem>>, %arg7: memref<64x128xbf16, #tpu.memory_space<vmem>>) attributes {dimension_semantics = [#tpu.dimension_semantics<parallel>], iteration_bounds = array<i64: 1>, scalar_prefetch = 0 : i64, scratch_operands = 0 : i64, tpu.core_type = #tpu.core_type<tc>, window_params = [{transform_indices = @transform_0, window_bounds = array<i64: 64, 128>}, {transform_indices = @transform_1, window_bounds = array<i64: 64, 64>}, {pipeline_mode = #tpu.pipeline_mode<synchronous>, transform_indices = @transform_2, window_bounds = array<i64: 64, 128>}, {pipeline_mode = #tpu.pipeline_mode<synchronous>, transform_indices = @transform_3, window_bounds = array<i64: 128, 128>}, {pipeline_mode = #tpu.pipeline_mode<synchronous>, transform_indices = @transform_4, window_bounds = array<i64: 128, 128>}, {pipeline_mode = #tpu.pipeline_mode<synchronous>, transform_indices = @transform_5, window_bounds = array<i64: 1, 128>}, {transform_indices = @transform_6, window_bounds = array<i64: 64, 128>}]} {
    %c0 = arith.constant 0 : index
    %c0_0 = arith.constant 0 : index
    %0 = vector.load %arg2[%c0, %c0_0] : memref<64x64xbf16, #tpu.memory_space<vmem>>, vector<64x64xbf16>
    %c0_1 = arith.constant 0 : index
    %c0_2 = arith.constant 0 : index
    %1 = vector.load %arg3[%c0_1, %c0_2] : memref<64x128xbf16, #tpu.memory_space<vmem>>, vector<64x128xbf16>
    %cst = arith.constant dense<0.000000e+00> : vector<64x128xf32>
    %2 = tpu.matmul %0, %1, %cst {dimension_numbers = #tpu.dot_dimension_numbers<[1], [0], [0], [1], [0, 0, 1, 1], [], []>} : vector<64x64xbf16>, vector<64x128xbf16>, vector<64x128xf32> -> vector<64x128xf32>
    %3 = arith.truncf %2 : vector<64x128xf32> to vector<64x128xbf16>
    %c0_3 = arith.constant 0 : index
    %c0_4 = arith.constant 0 : index
    %4 = vector.load %arg4[%c0_3, %c0_4] : memref<128x128xbf16, #tpu.memory_space<vmem>>, vector<128x128xbf16>
    %cst_5 = arith.constant dense<0.000000e+00> : vector<64x128xf32>
    %5 = tpu.matmul %3, %4, %cst_5 {dimension_numbers = #tpu.dot_dimension_numbers<[1], [0], [0], [1], [0, 0, 1, 1], [], []>} : vector<64x128xbf16>, vector<128x128xbf16>, vector<64x128xf32> -> vector<64x128xf32>
    %c0_6 = arith.constant 0 : index
    %c0_7 = arith.constant 0 : index
    %6 = vector.load %arg1[%c0_6, %c0_7] : memref<64x128xbf16, #tpu.memory_space<vmem>>, vector<64x128xbf16>
    %c0_8 = arith.constant 0 : index
    %c0_9 = arith.constant 0 : index
    %7 = vector.load %arg5[%c0_8, %c0_9] : memref<128x128xbf16, #tpu.memory_space<vmem>>, vector<128x128xbf16>
    %cst_10 = arith.constant dense<0.000000e+00> : vector<64x128xf32>
    %8 = tpu.matmul %6, %7, %cst_10 {dimension_numbers = #tpu.dot_dimension_numbers<[1], [0], [0], [1], [0, 0, 1, 1], [], []>} : vector<64x128xbf16>, vector<128x128xbf16>, vector<64x128xf32> -> vector<64x128xf32>
    %9 = arith.addf %5, %8 : vector<64x128xf32>
    %c0_11 = arith.constant 0 : index
    %c0_12 = arith.constant 0 : index
    %10 = vector.load %arg6[%c0_11, %c0_12] : memref<1x128xf32, #tpu.memory_space<vmem>>, vector<1x128xf32>
    %11 = vector.broadcast %10 : vector<1x128xf32> to vector<64x128xf32>
    %12 = arith.addf %9, %11 : vector<64x128xf32>
    %cst_13 = arith.constant 0.000000e+00 : f32
    %13 = vector.broadcast %cst_13 : f32 to vector<64x128xf32>
    %14 = arith.maximumf %12, %13 : vector<64x128xf32>
    %15 = arith.truncf %14 : vector<64x128xf32> to vector<64x128xbf16>
    %c0_14 = arith.constant 0 : index
    %c0_15 = arith.constant 0 : index
    %16 = vector.load %arg7[%c0_14, %c0_15] : memref<64x128xbf16, #tpu.memory_space<vmem>>, vector<64x128xbf16>
    tpu.vector_store %arg7[%c0_14, %c0_15], %15 {strides = array<i32>} : memref<64x128xbf16, #tpu.memory_space<vmem>>, vector<64x128xbf16>,
    return
  }
  func.func @transform_0(%arg0: i32) -> (i32, i32) {
    %c0_i32 = arith.constant 0 : i32
    %c0_i32_0 = arith.constant 0 : i32
    return %arg0, %c0_i32 : i32, i32
  }
  func.func @transform_1(%arg0: i32) -> (i32, i32) {
    %c0_i32 = arith.constant 0 : i32
    %c0_i32_0 = arith.constant 0 : i32
    return %arg0, %c0_i32 : i32, i32
  }
  func.func @transform_2(%arg0: i32) -> (i32, i32) {
    %c0_i32 = arith.constant 0 : i32
    %c0_i32_0 = arith.constant 0 : i32
    %c0_i32_1 = arith.constant 0 : i32
    return %c0_i32, %c0_i32_0 : i32, i32
  }
  func.func @transform_3(%arg0: i32) -> (i32, i32) {
    %c0_i32 = arith.constant 0 : i32
    %c0_i32_0 = arith.constant 0 : i32
    %c0_i32_1 = arith.constant 0 : i32
    return %c0_i32, %c0_i32_0 : i32, i32
  }
  func.func @transform_4(%arg0: i32) -> (i32, i32) {
    %c0_i32 = arith.constant 0 : i32
    %c0_i32_0 = arith.constant 0 : i32
    %c0_i32_1 = arith.constant 0 : i32
    return %c0_i32, %c0_i32_0 : i32, i32
  }
  func.func @transform_5(%arg0: i32) -> (i32, i32) {
    %c0_i32 = arith.constant 0 : i32
    %c0_i32_0 = arith.constant 0 : i32
    %c0_i32_1 = arith.constant 0 : i32
    return %c0_i32, %c0_i32_0 : i32, i32
  }
  func.func @transform_6(%arg0: i32) -> (i32, i32) {
    %c0_i32 = arith.constant 0 : i32
    %c0_i32_0 = arith.constant 0 : i32
    return %arg0, %c0_i32 : i32, i32
  }
}

</mosaic_0001>

<bundles_post_ra>
// kernel: tpu_custom_call.1
= control target key start
LH: loop header
LB: loop body
LE: loop exit
PB: predicated region body
PF: predicated region fallthrough
CT: control target
= control target key end

     0   :  { %11 = vsyncpa [#allocation3], 0  ;;  %s1113_s0 = inlined_call_operand.hbm [shape: bf16[64,128], index: 0, kind: input, shape index: {}]   ;;  %s1114_s1 = inlined_call_operand.hbm [shape: bf16[64,64], index: 1, kind: input, shape index: {}]   ;;  %s1115_s2 = inlined_call_operand.hbm [shape: bf16[64,128], index: 2, kind: input, shape index: {}]   ;;  %s1116_s3 = inlined_call_operand.hbm [shape: bf16[128,128], index: 3, kind: input, shape index: {}]   ;;  %s1117_s4 = inlined_call_operand.hbm [shape: bf16[128,128], index: 4, kind: input, shape index: {}]   ;;  %s1118_s5 = inlined_call_operand.vmem [shape: f32[1,128], index: 5, kind: input, shape index: {}]   ;;  %s1119_s6 = inlined_call_operand.hbm [shape: bf16[64,128], index: 6, kind: output, shape index: {}]  }
   0x1   :  { %12 = vsyncpa [#allocation6], 0 }
   0x2   :  { %13 = vsyncpa [#allocation9], 0 }
   0x3   :  { %14 = vsyncpa [#allocation4], 0  ;;  %s959_s21 = smov [#allocation5]   ;;  %s960_s23 = smov [#allocation8]  }
   0x4   :  { %s32_s22 = sshll.u32 %s959_s21, 4  ;;  %s56_s24 = sshll.u32 %s960_s23, 4  ;;  %s33_s22 = int_to_ptr.vmem [resolvable:$true] %s32_s22  ;;  %s1002_s24 = int_to_ptr.vmem [resolvable:$true] %s56_s24 }
   0x5   :  { %s819_s27 = scalar_lea.hbm %s1114_s1, 512 }
   0x6   :  { %p820_p0 = scmp.ne.s32.totalorder %s1114_s1, %s819_s27  ;;  %p823_p1 = scmp.lt.u32.totalorder %s819_s27, %s1114_s1 }
   0x8   :  { %p825_p2 = pnand %p823_p1, %p820_p0 }
   0xa   :  { %828 = shalt.err (!%p825_p2)
}
   0xb   :  { %s829_s8 = scalar_lea.vmem %s33_s22, 512  ;;  %p834_p4 = scmp.lt.s32.totalorder %s33_s22, %s33_s22 }
   0xc   :  { %p830_p3 = scmp.ne.s32.totalorder %s33_s22, %s829_s8  ;;  %p835_p5 = scmp.lt.s32.totalorder %s829_s8, %s829_s8 }
   0xe   :  { %p836_p6 = por %p835_p5, %p834_p4 }
  0x10   :  { %p837_p7 = pnand %p836_p6, %p830_p3 }
  0x12   :  { %840 = shalt.err (!%p837_p7)
}
  0x13   :  { %s961_s9 = smov 64   ;;  %s962_s10 = smov 4  }
  0x14   :  { %38 = dma.hbm_to_vmem [thread:$0]  %s1114_s1, 512, %s33_s22, [#allocation6], %s961_s9, %s961_s9, %s962_s10  }
  0x15   :  { %s841_s15 = scalar_lea.hbm %s1116_s3, 1024 }
  0x16   :  { %p842_p8 = scmp.ne.s32.totalorder %s1116_s3, %s841_s15  ;;  %p845_p9 = scmp.lt.u32.totalorder %s841_s15, %s1116_s3 }
  0x18   :  { %p847_p10 = pnand %p845_p9, %p842_p8 }
  0x1a   :  { %850 = shalt.err (!%p847_p10)
}
  0x1b   :  { %s851_s20 = scalar_lea.vmem %s1002_s24, 1024  ;;  %p856_p12 = scmp.lt.s32.totalorder %s1002_s24, %s1002_s24 }
  0x1c   :  { %p852_p11 = scmp.ne.s32.totalorder %s1002_s24, %s851_s20  ;;  %p857_p13 = scmp.lt.s32.totalorder %s851_s20, %s851_s20 }
  0x1e   :  { %p858_p0 = por %p857_p13, %p856_p12 }
  0x20   :  { %p859_p1 = pnand %p858_p0, %p852_p11 }
  0x22   :  { %862 = shalt.err (!%p859_p1)
}
  0x23   :  { %62 = dma.hbm_to_vmem [thread:$0]  %s1116_s3, 1024, %s1002_s24, [#allocation9], %s961_s9, %s961_s9, %s962_s10  }
  0x24   :  { %s963_s22 = smov [#allocation2]   ;;  %s964_s25 = smov [#allocation7]  }
  0x25   :  { %s20_s23 = sshll.u32 %s963_s22, 4  ;;  %s44_s26 = sshll.u32 %s964_s25, 4  ;;  %s21_s23 = int_to_ptr.vmem [resolvable:$true] %s20_s23  ;;  %s1039_s26 = int_to_ptr.vmem [resolvable:$true] %s44_s26 }
  0x26   :  { %s863_s29 = scalar_lea.hbm %s1113_s0, 512 }
  0x27   :  { %p864_p2 = scmp.ne.s32.totalorder %s1113_s0, %s863_s29  ;;  %p867_p3 = scmp.lt.u32.totalorder %s863_s29, %s1113_s0 }
  0x29   :  { %p869_p4 = pnand %p867_p3, %p864_p2 }
  0x2b   :  { %872 = shalt.err (!%p869_p4)
}
  0x2c   :  { %s873_s3 = scalar_lea.vmem %s21_s23, 512  ;;  %p878_p6 = scmp.lt.s32.totalorder %s21_s23, %s21_s23 }
  0x2d   :  { %p874_p5 = scmp.ne.s32.totalorder %s21_s23, %s873_s3  ;;  %p879_p7 = scmp.lt.s32.totalorder %s873_s3, %s873_s3 }
  0x2f   :  { %p880_p8 = por %p879_p7, %p878_p6 }
  0x31   :  { %p881_p9 = pnand %p880_p8, %p874_p5 }
  0x33   :  { %884 = shalt.err (!%p881_p9)
}
  0x34   :  { %26 = dma.hbm_to_vmem [thread:$0]  %s1113_s0, 512, %s21_s23, [#allocation3], %s961_s9, %s961_s9, %s962_s10  }
  0x35   :  { %s885_s15 = scalar_lea.hbm %s1115_s2, 512 }
  0x36   :  { %p886_p10 = scmp.ne.s32.totalorder %s1115_s2, %s885_s15  ;;  %p889_p11 = scmp.lt.u32.totalorder %s885_s15, %s1115_s2 }
  0x38   :  { %p891_p12 = pnand %p889_p11, %p886_p10 }
  0x3a   :  { %894 = shalt.err (!%p891_p12)
}
  0x3b   :  { %s895_s20 = scalar_lea.vmem %s1039_s26, 512  ;;  %p900_p0 = scmp.lt.s32.totalorder %s1039_s26, %s1039_s26 }
  0x3c   :  { %p896_p13 = scmp.ne.s32.totalorder %s1039_s26, %s895_s20  ;;  %p901_p1 = scmp.lt.s32.totalorder %s895_s20, %s895_s20 }
  0x3e   :  { %p902_p2 = por %p901_p1, %p900_p0 }
  0x40   :  { %p903_p3 = pnand %p902_p2, %p896_p13 }
  0x42   :  { %906 = shalt.err (!%p903_p3)
}
  0x43   :  { %50 = dma.hbm_to_vmem [thread:$0]  %s1115_s2, 512, %s1039_s26, [#allocation6], %s961_s9, %s961_s9, %s962_s10  }
  0x44   :  { %s965_s21 = smov [#allocation10]   ;;  %s907_s27 = scalar_lea.hbm %s1117_s4, 1024 }
  0x45   :  { %s68_s22 = sshll.u32 %s965_s21, 4  ;;  %p908_p4 = scmp.ne.s32.totalorder %s1117_s4, %s907_s27  ;;  %s69_s22 = int_to_ptr.vmem [resolvable:$true] %s68_s22 }
  0x46   :  { %p911_p5 = scmp.lt.u32.totalorder %s907_s27, %s1117_s4 }
  0x48   :  { %p913_p6 = pnand %p911_p5, %p908_p4 }
  0x4a   :  { %916 = shalt.err (!%p913_p6)
}
  0x4b   :  { %s917_s8 = scalar_lea.vmem %s69_s22, 1024  ;;  %p922_p8 = scmp.lt.s32.totalorder %s69_s22, %s69_s22 }
  0x4c   :  { %p918_p7 = scmp.ne.s32.totalorder %s69_s22, %s917_s8  ;;  %p923_p9 = scmp.lt.s32.totalorder %s917_s8, %s917_s8 }
  0x4e   :  { %p924_p10 = por %p923_p9, %p922_p8 }
  0x50   :  { %p925_p11 = pnand %p924_p10, %p918_p7 }
  0x52   :  { %928 = shalt.err (!%p925_p11)
}
  0x53   :  { %74 = dma.hbm_to_vmem [thread:$0]  %s1117_s4, 1024, %s69_s22, [#allocation9], %s961_s9, %s961_s9, %s962_s10  }
  0x54   :  { %951 = dma.done.wait [#allocation3], 512  }
  0x55   :  { %952 = vsyncadd [#allocation3], 4294966784 }
  0x56   :  { %953 = dma.done.wait [#allocation6], 1024  }
  0x57   :  { %954 = vsyncadd [#allocation6], 4294966272 }
  0x58   :  { %955 = dma.done.wait [#allocation9], 2048  }
  0x59   :  { %956 = vsyncadd [#allocation9], 4294965248  ;;  %v791_v0 = vld [vmem:[#allocation7] sm:$0xff]   ;;  %v792_v1 = vld [vmem:[#allocation7 + $0x8] sm:$0xff]   ;;  %vm153_vm0 = vcmask 523264  }
  0x5a   :  { %711 = vmatprep.subr.bf16.mxu0 %v791_v0  ;;  %v793_v2 = vld [vmem:[#allocation7 + $0x10] sm:$0xff]   ;;  %v795_v3 = vld [vmem:[#allocation5] sm:$0xff]   ;;  %v794_v4 = vld [vmem:[#allocation7 + $0x18] sm:$0xff]  }
  0x5b   :  { %712 = vmatpush3.bf16.msra.mxu0 %v791_v0  ;;  %719 = vmatprep.mubr.msk.bf16.mxu0 %vm153_vm0, %v795_v3  ;;  %v800_v5 = vld [vmem:[#allocation8] sm:$0xff]   ;;  %v802_v6 = vld [vmem:[#allocation8 + $0x8] sm:$0xff]   ;;  %v804_v8 = vld [vmem:[#allocation8 + $0x10] sm:$0xff]  }
  0x5c   :  { %713 = vmatprep.subr.bf16.mxu0 %v792_v1  ;;  %751 = vmatprep.subr.bf16.mxu1 %v800_v5  ;;  %v799_v7 = vld [vmem:[#allocation10] sm:$0xff]   ;;  %v796_v9 = vld [vmem:[#allocation5 + $0x8] sm:$0xff]   ;;  %v797_v10 = vld [vmem:[#allocation5 + $0x10] sm:$0xff]  }
  0x5d   :  { %752 = vmatpush3.bf16.msra.mxu1 %v800_v5  ;;  %v801_v11 = vld [vmem:[#allocation10 + $0x8] sm:$0xff]   ;;  %v806_v12 = vld [vmem:[#allocation8 + $0x18] sm:$0xff]   ;;  %v803_v14 = vld [vmem:[#allocation10 + $0x10] sm:$0xff]  }
  0x5e   :  { %753 = vmatprep.subr.bf16.mxu1 %v802_v6  ;;  %v798_v13 = vld [vmem:[#allocation5 + $0x18] sm:$0xff]   ;;  %v808_v15 = vld [vmem:[#allocation8 + $0x20] sm:$0xff]   ;;  %v810_v17 = vld [vmem:[#allocation8 + $0x28] sm:$0xff]  }
  0x5f   :  { %714 = vmatpush3.bf16.msra.mxu0 %v792_v1  ;;  %v805_v16 = vld [vmem:[#allocation10 + $0x18] sm:$0xff]   ;;  %v807_v18 = vld [vmem:[#allocation10 + $0x20] sm:$0xff]   ;;  %v812_v19 = vld [vmem:[#allocation8 + $0x30] sm:$0xff]  }
  0x60   :  { %715 = vmatprep.subr.bf16.mxu0 %v793_v2  ;;  %v809_v20 = vld [vmem:[#allocation10 + $0x28] sm:$0xff]   ;;  %v811_v21 = vld [vmem:[#allocation10 + $0x30] sm:$0xff]   ;;  %v813_v22 = vld [vmem:[#allocation10 + $0x38] sm:$0xff]  }
  0x61   :  { %754 = vmatpush3.bf16.msra.mxu1 %v802_v6  ;;  %v814_v23 = vld [vmem:[#allocation2] sm:$0xff]   ;;  %v815_v24 = vld [vmem:[#allocation8 + $0x38] sm:$0xff]   ;;  %v816_v25 = vld [vmem:[#allocation2 + $0x8] sm:$0xff]  }
  0x62   :  { %755 = vmatprep.subr.bf16.mxu1 %v804_v8  ;;  %v817_v26 = vld [vmem:[#allocation2 + $0x10] sm:$0xff]   ;;  %v818_v27 = vld [vmem:[#allocation2 + $0x18] sm:$0xff]   ;;  %v639_v49 = vld [vmem:[%s1118_s5] ss:$0 sm:$0xff]  ;;  %s966_s5 = smov [#allocation11]  }
  0x63   :  { %716 = vmatpush3.bf16.msra.mxu0 %v793_v2  ;;  %s593_s3 = sshll.u32 %s966_s5, 4  ;;  %s594_s3 = int_to_ptr.vmem [resolvable:$true] %s593_s3 }
  0x64   :  { %717 = vmatprep.subr.bf16.mxu0 %v794_v4  ;;  %s929_s24 = scalar_lea.vmem %s594_s3, 512  ;;  %p934_p13 = scmp.lt.s32.totalorder %s594_s3, %s594_s3 }
  0x65   :  { %756 = vmatpush3.bf16.msra.mxu1 %v804_v8  ;;  %p930_p12 = scmp.ne.s32.totalorder %s594_s3, %s929_s24  ;;  %p935_p0 = scmp.lt.s32.totalorder %s929_s24, %s929_s24 }
  0x66   :  { %757 = vmatprep.subr.bf16.mxu1 %v806_v12 }
  0x67   :  { %718 = vmatpush3.bf16.msra.mxu0 %v794_v4  ;;  %p936_p1 = por %p935_p0, %p934_p13 }
  0x68   :  { %727 = vmatprep.subr.bf16.mxu0 %v799_v7 }
  0x69   :  { %758 = vmatpush3.bf16.msra.mxu1 %v806_v12  ;;  %p937_p2 = pnand %p936_p1, %p930_p12 }
  0x6a   :  { %720 = vmatmul.mubr.msk.bf16.vlgmr.msra.gmra.mrb[0].mxu0 %vm153_vm0, %v796_v9  ;;  %759 = vmatprep.subr.bf16.mxu1 %v808_v15 }
  0x6b   :  { %723 = vmatprep.mubr.msk.bf16.mxu0 %vm153_vm0, %v797_v10  ;;  %728 = vmatpush3.bf16.msra.mxu0 %v799_v7 }
  0x6c   :  { %729 = vmatprep.subr.bf16.mxu0 %v801_v11 }
  0x6d   :  { %760 = vmatpush3.bf16.msra.mxu1 %v808_v15 }
  0x6e   :  { %761 = vmatprep.subr.bf16.mxu1 %v810_v17 }
  0x6f   :  { %730 = vmatpush3.bf16.msra.mxu0 %v801_v11 }
  0x70   :  { %731 = vmatprep.subr.bf16.mxu0 %v803_v14 }
  0x71   :  { %762 = vmatpush3.bf16.msra.mxu1 %v810_v17 }
  0x72   :  { %724 = vmatmul.mubr.msk.bf16.gmra.mrb[4].mxu0 %vm153_vm0, %v798_v13  ;;  %763 = vmatprep.subr.bf16.mxu1 %v812_v19 }
  0x73   :  { %732 = vmatpush3.bf16.msra.mxu0 %v803_v14  ;;  %743 = vmatprep.mubr.bf16.mxu0 %v814_v23 }
  0x74   :  { %733 = vmatprep.subr.bf16.mxu0 %v805_v16 }
  0x75   :  { %764 = vmatpush3.bf16.msra.mxu1 %v812_v19 }
  0x76   :  { %765 = vmatprep.subr.bf16.mxu1 %v815_v24 }
  0x77   :  { %734 = vmatpush3.bf16.msra.mxu0 %v805_v16 }
  0x78   :  { %735 = vmatprep.subr.bf16.mxu0 %v807_v18 }
  0x79   :  { %766 = vmatpush3.bf16.msra.mxu1 %v815_v24 }
  0x7b   :  { %736 = vmatpush3.bf16.msra.mxu0 %v807_v18 }
  0x7c   :  { %737 = vmatprep.subr.bf16.mxu0 %v809_v20 }
  0x7f   :  { %738 = vmatpush3.bf16.msra.mxu0 %v809_v20 }
  0x80   :  { %739 = vmatprep.subr.bf16.mxu0 %v811_v21 }
  0x83   :  { %740 = vmatpush3.bf16.msra.mxu0 %v811_v21 }
  0x84   :  { %741 = vmatprep.subr.bf16.mxu0 %v813_v22 }
  0x87   :  { %742 = vmatpush3.bf16.msra.mxu0 %v813_v22 }
  0x8a   :  { %744 = vmatmul.mubr.bf16.vlgmr.msra.gmra.mrb[8].mxu0 %v816_v25 }
  0x8b   :  { %747 = vmatprep.mubr.bf16.mxu0 %v817_v26 }
  0x92   :  { %748 = vmatmul.mubr.bf16.gmra.mrb[12].mxu0 %v818_v27 }
 0x13d   :  { %v721_v28 = vpop.f32.mrb[0].mxu0 }
 0x13e   :  { %v200_v29 = vpop.f32.mrb[1].mxu0 }
 0x13f   :  { %v722_v30 = vpop.f32.mrb[2].mxu0 }
 0x140   :  { %v232_v31 = vpack.c.bf16 %v722_v30, %v721_v28  ;;  %v203_v32 = vpop.f32.mrb[3].mxu0 }
 0x141   :  { %v231_v33 = vpack.c.bf16 %v203_v32, %v200_v29 }
 0x143   :  { %767 = vmatprep.mubr.bf16.mxu1 %v231_v33 }
 0x144   :  { %768 = vmatmul.mubr.bf16.vlgmr.msra.gmra.mrb[0].mxu1 %v232_v31 }
 0x145   :  { %v725_v34 = vpop.f32.mrb[4].mxu0 }
 0x146   :  { %v216_v35 = vpop.f32.mrb[5].mxu0 }
 0x147   :  { %v726_v36 = vpop.f32.mrb[6].mxu0 }
 0x148   :  { %v234_v37 = vpack.c.bf16 %v726_v36, %v725_v34  ;;  %v219_v38 = vpop.f32.mrb[7].mxu0 }
 0x149   :  { %v233_v39 = vpack.c.bf16 %v219_v38, %v216_v35 }
 0x14b   :  { %771 = vmatprep.mubr.bf16.mxu1 %v233_v39 }
 0x14c   :  { %772 = vmatmul.mubr.bf16.gmra.mrb[4].mxu1 %v234_v37 }
 0x15d   :  { %v745_v40 = vpop.f32.mrb[8].mxu0 }
 0x15e   :  { %v381_v41 = vpop.f32.mrb[9].mxu0 }
 0x15f   :  { %v746_v42 = vpop.f32.mrb[10].mxu0 }
 0x160   :  { %v384_v43 = vpop.f32.mrb[11].mxu0 }
 0x165   :  { %v749_v44 = vpop.f32.mrb[12].mxu0 }
 0x166   :  { %v397_v45 = vpop.f32.mrb[13].mxu0 }
 0x167   :  { %v750_v46 = vpop.f32.mrb[14].mxu0 }
 0x168   :  { %v400_v47 = vpop.f32.mrb[15].mxu0 }
 0x217   :  { %v769_v48 = vpop.f32.mrb[0].mxu1 }
 0x218   :  { %v503_v50 = vadd.f32 %v769_v48, %v745_v40  ;;  %v494_v51 = vpop.f32.mrb[1].mxu1 }
 0x219   :  { %v495_v52 = vadd.f32 %v494_v51, %v381_v41  ;;  %v770_v53 = vpop.f32.mrb[2].mxu1 }
 0x21a   :  { %v534_v54 = vadd.f32 %v639_v49, %v503_v50  ;;  %v506_v55 = vadd.f32 %v770_v53, %v746_v42  ;;  %v497_v56 = vpop.f32.mrb[3].mxu1 }
 0x21b   :  { %v532_v57 = vadd.f32 %v639_v49, %v495_v52  ;;  %v498_v58 = vadd.f32 %v497_v56, %v384_v43 }
 0x21c   :  { %v535_v59 = vadd.f32 %v639_v49, %v506_v55  ;;  %v542_v61 = vmax.f32 %v534_v54, 0.0 }
 0x21d   :  { %v533_v60 = vadd.f32 %v639_v49, %v498_v58  ;;  %v540_v63 = vmax.f32 %v532_v57, 0.0 }
 0x21e   :  { %v543_v62 = vmax.f32 %v535_v59, 0.0 }
 0x21f   :  { %v541_v0 = vmax.f32 %v533_v60, 0.0  ;;  %v773_v1 = vpop.f32.mrb[4].mxu1 }
 0x220   :  { %v664_v2 = vpack.c.bf16 %v543_v62, %v542_v61  ;;  %v519_v3 = vadd.f32 %v773_v1, %v749_v44  ;;  %v510_v4 = vpop.f32.mrb[5].mxu1 }
 0x221   :  { %v659_v5 = vpack.c.bf16 %v541_v0, %v540_v63  ;;  %v511_v6 = vadd.f32 %v510_v4, %v397_v45  ;;  %v774_v7 = vpop.f32.mrb[6].mxu1 }
 0x222   :  { %676 = vst [vmem:[#allocation11 + $0x8] sm:$0xff] %v664_v2   ;;  %v538_v8 = vadd.f32 %v639_v49, %v519_v3  ;;  %v522_v9 = vadd.f32 %v774_v7, %v750_v46  ;;  %v513_v10 = vpop.f32.mrb[7].mxu1 }
 0x223   :  { %660 = vst [vmem:[#allocation11] sm:$0xff] %v659_v5   ;;  %v536_v11 = vadd.f32 %v639_v49, %v511_v6  ;;  %v514_v12 = vadd.f32 %v513_v10, %v400_v47 }
 0x224   :  { %v539_v13 = vadd.f32 %v639_v49, %v522_v9  ;;  %v546_v15 = vmax.f32 %v538_v8, 0.0 }
 0x225   :  { %v537_v14 = vadd.f32 %v639_v49, %v514_v12  ;;  %v544_v17 = vmax.f32 %v536_v11, 0.0 }
 0x226   :  { %v547_v16 = vmax.f32 %v539_v13, 0.0 }
 0x227   :  { %v545_v18 = vmax.f32 %v537_v14, 0.0 }
 0x228   :  { %v674_v19 = vpack.c.bf16 %v547_v16, %v546_v15 }
 0x229   :  { %v669_v20 = vpack.c.bf16 %v545_v18, %v544_v17 }
 0x22a   :  { %678 = vst [vmem:[#allocation11 + $0x18] sm:$0xff] %v674_v19  }
 0x22b   :  { %677 = vst [vmem:[#allocation11 + $0x10] sm:$0xff] %v669_v20  }
 0x22c   :  { %940 = shalt.err (!%p937_p2)
}
 0x22d   :  { %s941_s14 = scalar_lea.hbm %s1119_s6, 512 }
 0x22e   :  { %p942_p3 = scmp.ne.s32.totalorder %s1119_s6, %s941_s14  ;;  %p945_p4 = scmp.lt.u32.totalorder %s941_s14, %s1119_s6 }
 0x230   :  { %p947_p5 = pnand %p945_p4, %p942_p3 }
 0x232   :  { %950 = shalt.err (!%p947_p5)
}
 0x233   :  { %599 = dma.vmem_to_hbm [thread:$0]  %s594_s3, 512, %s1119_s6, [#allocation4], %s961_s9, %s961_s9, %s962_s10  }
 0x234   :  { %957 = dma.done.wait [#allocation4], 512  }
 0x235   :  { %958 = vsyncadd [#allocation4], 4294966784 }
 0x236   :  { %603 = vsyncpa [#allocation3], 1 }
 0x237   :  { %604 = vsyncpa [#allocation6], 1 }
 0x238   :  { %605 = vsyncpa [#allocation9], 1 }
 0x239   :  { %606 = vsyncpa [#allocation4], 1 }

</bundles_post_ra>
